<compile_context>
chip_gen: v5e
topology: v5e:2x2
jax: 0.10.0
libtpu: 0.0.40
codegen_flags: <defaults>
</compile_context>

<pallas_src>
import functools
import math

import jax
import jax.numpy as jnp
from jax.experimental import pallas as pl
from jax.experimental.pallas import tpu as pltpu


def _pick_nf(n_features, d_in, d_out, *, itemsize=4,
             weight_budget_bytes=6 << 20, max_nf=32):
    """Feature-group size: largest divisor of F (<= max_nf) whose fused input
    and output widths are lane-dense (multiples of 128) and whose
    double-buffered weight block fits the VMEM budget."""
    divisors = [d for d in range(1, n_features + 1) if n_features % d == 0]
    aligned = [d for d in divisors
               if (d * d_in) % 128 == 0 and (d * d_out) % 128 == 0]
    fits = lambda nf: 2 * nf * d_in * d_out * itemsize <= weight_budget_bytes
    good = [d for d in aligned if d <= max_nf and fits(d)]
    if good:
        return max(good)
    if aligned:
        return min(aligned)  # correctness first: smallest aligned group
    # No lane-aligned divisor exists: full-extent feature blocks are always a
    # legal BlockSpec. TODO(synk): for very large, oddly-shaped F this unrolls
    # F matmuls; pad the feature axis instead if that ever shows up.
    return n_features


def _pick_tb(b_pad, nf, d_in, d_out, *, itemsize=4,
             act_budget_bytes=8 << 20, max_tb=512):
    """Batch tile: largest multiple-of-8 divisor of the padded batch that keeps
    the double-buffered x/out blocks inside the activation VMEM budget."""
    per_row = 2 * nf * (d_in + d_out) * itemsize
    cap = min(max_tb, b_pad, max(8, (act_budget_bytes // per_row) // 8 * 8))
    best = 8
    for tb in range(8, cap + 1, 8):
        if b_pad % tb == 0:
            best = tb
    return best


def _nlinear_kernel(*refs, nf, d_in, d_out, with_bias):
    # refs (with bias):    x_ref (tb, nf*d_in), w_ref (nf, d_in, d_out),
    #                      b_ref (1, nf*d_out), o_ref (tb, nf*d_out)
    # refs (without bias): x_ref, w_ref, o_ref
    if with_bias:
        x_ref, w_ref, b_ref, o_ref = refs
    else:
        x_ref, w_ref, o_ref = refs
        b_ref = None

    x = x_ref[...]                                   # lane-dense block load
    for j in range(nf):                              # static unroll over group
        xj = x[:, j * d_in:(j + 1) * d_in]           # (tb, d_in) static slice
        yj = jnp.dot(xj, w_ref[j],                   # MXU matmul
                     preferred_element_type=jnp.float32)
        if with_bias:
            yj = yj + b_ref[:, j * d_out:(j + 1) * d_out]
        # Store straight into this feature's lane slice of the output block.
        o_ref[:, j * d_out:(j + 1) * d_out] = yj.astype(o_ref.dtype)


def nlinear(x, weight, bias=None):
    """Pallas equivalent of NLinear.forward.

    x:      (B, F, d_in) float32
    weight: (F, d_in, d_out) float32
    bias:   (F, d_out) float32 or None
    returns (B, F, d_out)
    """
    B, F, d_in = x.shape
    F2, d_in2, d_out = weight.shape
    assert (F, d_in) == (F2, d_in2)
    with_bias = bias is not None

    itemsize = x.dtype.itemsize
    nf = _pick_nf(F, d_in, d_out, itemsize=weight.dtype.itemsize)
    n_groups = F // nf

    b_pad = -(-B // 8) * 8                       # sublane-align the batch only
    tb = _pick_tb(b_pad, nf, d_in, d_out, itemsize=itemsize)

    x2 = x.reshape(B, F * d_in)                  # free row-major view
    if b_pad != B:
        x2 = jnp.pad(x2, ((0, b_pad - B), (0, 0)))

    kernel = functools.partial(_nlinear_kernel, nf=nf, d_in=d_in,
                               d_out=d_out, with_bias=with_bias)

    in_specs = [
        pl.BlockSpec((tb, nf * d_in), lambda g, i: (i, g)),
        pl.BlockSpec((nf, d_in, d_out), lambda g, i: (g, 0, 0)),
    ]
    operands = [x2, weight]
    if with_bias:
        in_specs.append(pl.BlockSpec((1, nf * d_out), lambda g, i: (0, g)))
        operands.append(bias.reshape(1, F * d_out))

    cost = pl.CostEstimate(
        flops=2 * b_pad * F * d_in * d_out,
        transcendentals=0,
        bytes_accessed=(b_pad * F * d_in + F * d_in * d_out
                        + (F * d_out if with_bias else 0)
                        + b_pad * F * d_out) * itemsize,
    )

    out2 = pl.pallas_call(
        kernel,
        out_shape=jax.ShapeDtypeStruct((b_pad, F * d_out), x.dtype),
        grid_spec=pltpu.PrefetchScalarGridSpec(
            num_scalar_prefetch=0,
            # Group axis outermost: the weight block stays resident across the
            # inner batch-tile sweep (weights hit HBM once).
            grid=(n_groups, b_pad // tb),
            in_specs=in_specs,
            out_specs=pl.BlockSpec((tb, nf * d_out), lambda g, i: (i, g)),
        ),
        compiler_params=pltpu.CompilerParams(
            dimension_semantics=("parallel", "parallel"),
            vmem_limit_bytes=32 << 20),
        cost_estimate=cost,
    )(*operands)

    return out2[:B].reshape(B, F, d_out)


if __name__ == "__main__":
    key = jax.random.PRNGKey(0)

    # NLinear(n_features=8, d_in=32, d_out=32), batch=2 (padded to 8 sublanes
    # inside the wrapper).
    B, F, d_in, d_out = 2, 8, 32, 32

    kw, kb, kx = jax.random.split(key, 3)
    bound = 1.0 / math.sqrt(d_in)  # matches nn.Linear default init bound
    weight = jax.random.uniform(kw, (F, d_in, d_out), jnp.float32, -bound, bound)
    bias = jax.random.uniform(kb, (F, d_out), jnp.float32, -bound, bound)
    x = jax.random.normal(kx, (B, F, d_in), jnp.float32)

    # Pallas kernel (with and without bias)
    out = jax.block_until_ready(nlinear(x, weight, bias))
    out_nb = jax.block_until_ready(nlinear(x, weight, None))

    # Pure-JAX reference (exact NLinear.forward semantics)
    ref = jnp.einsum("bfi,fio->bfo", x, weight) + bias[None]
    ref_nb = jnp.einsum("bfi,fio->bfo", x, weight)

    assert out.shape == (B, F, d_out)
    assert jnp.allclose(out, ref, atol=1e-5, rtol=1e-5), float(
        jnp.max(jnp.abs(out - ref)))
    assert jnp.allclose(out_nb, ref_nb, atol=1e-5, rtol=1e-5), float(
        jnp.max(jnp.abs(out_nb - ref_nb)))

    print("KERNEL_OK")
</pallas_src>

<mosaic_0001>
module attributes {stable_mosaic.version = 11 : i64} {
  func.func @_nlinear_kernel(%arg0: i32, %arg1: i32, %arg2: memref<8x256xf32, #tpu.memory_space<vmem>>, %arg3: memref<8x32x32xf32, #tpu.memory_space<vmem>>, %arg4: memref<1x256xf32, #tpu.memory_space<vmem>>, %arg5: memref<8x256xf32, #tpu.memory_space<vmem>>) attributes {dimension_semantics = [#tpu.dimension_semantics<parallel>, #tpu.dimension_semantics<parallel>], iteration_bounds = array<i64: 1, 1>, scalar_prefetch = 0 : i64, scratch_operands = 0 : i64, tpu.core_type = #tpu.core_type<tc>, window_params = [{transform_indices = @transform_0, window_bounds = array<i64: 8, 256>}, {transform_indices = @transform_1, window_bounds = array<i64: 8, 32, 32>}, {transform_indices = @transform_2, window_bounds = array<i64: 1, 256>}, {transform_indices = @transform_3, window_bounds = array<i64: 8, 256>}]} {
    %c0 = arith.constant 0 : index
    %c0_0 = arith.constant 0 : index
    %0 = vector.load %arg2[%c0, %c0_0] : memref<8x256xf32, #tpu.memory_space<vmem>>, vector<8x256xf32>
    %1 = vector.extract_strided_slice %0 {offsets = [0, 0], sizes = [8, 32], strides = [1, 1]} : vector<8x256xf32> to vector<8x32xf32>
    %c0_1 = arith.constant 0 : index
    %c0_2 = arith.constant 0 : index
    %c0_3 = arith.constant 0 : index
    %2 = vector.load %arg3[%c0_1, %c0_2, %c0_3] : memref<8x32x32xf32, #tpu.memory_space<vmem>>, vector<1x32x32xf32>
    %3 = vector.shape_cast %2 : vector<1x32x32xf32> to vector<32x32xf32>
    %cst = arith.constant dense<0.000000e+00> : vector<8x32xf32>
    %4 = tpu.matmul %1, %3, %cst {dimension_numbers = #tpu.dot_dimension_numbers<[1], [0], [0], [1], [0, 0, 1, 1], [], []>} : vector<8x32xf32>, vector<32x32xf32>, vector<8x32xf32> -> vector<8x32xf32>
    %c0_4 = arith.constant 0 : index
    %c0_5 = arith.constant 0 : index
    %5 = vector.load %arg4[%c0_4, %c0_5] : memref<1x256xf32, #tpu.memory_space<vmem>>, vector<1x32xf32>
    %6 = vector.broadcast %5 : vector<1x32xf32> to vector<8x32xf32>
    %7 = arith.addf %4, %6 : vector<8x32xf32>
    %c0_6 = arith.constant 0 : index
    %c0_7 = arith.constant 0 : index
    %8 = vector.load %arg5[%c0_6, %c0_7] : memref<8x256xf32, #tpu.memory_space<vmem>>, vector<8x32xf32>
    tpu.vector_store %arg5[%c0_6, %c0_7], %7 {strides = array<i32>} : memref<8x256xf32, #tpu.memory_space<vmem>>, vector<8x32xf32>,
    %9 = vector.extract_strided_slice %0 {offsets = [0, 32], sizes = [8, 32], strides = [1, 1]} : vector<8x256xf32> to vector<8x32xf32>
    %c1 = arith.constant 1 : index
    %c0_8 = arith.constant 0 : index
    %c0_9 = arith.constant 0 : index
    %10 = vector.load %arg3[%c1, %c0_8, %c0_9] : memref<8x32x32xf32, #tpu.memory_space<vmem>>, vector<1x32x32xf32>
    %11 = vector.shape_cast %10 : vector<1x32x32xf32> to vector<32x32xf32>
    %cst_10 = arith.constant dense<0.000000e+00> : vector<8x32xf32>
    %12 = tpu.matmul %9, %11, %cst_10 {dimension_numbers = #tpu.dot_dimension_numbers<[1], [0], [0], [1], [0, 0, 1, 1], [], []>} : vector<8x32xf32>, vector<32x32xf32>, vector<8x32xf32> -> vector<8x32xf32>
    %c0_11 = arith.constant 0 : index
    %c32 = arith.constant 32 : index
    %13 = vector.load %arg4[%c0_11, %c32] : memref<1x256xf32, #tpu.memory_space<vmem>>, vector<1x32xf32>
    %14 = vector.broadcast %13 : vector<1x32xf32> to vector<8x32xf32>
    %15 = arith.addf %12, %14 : vector<8x32xf32>
    %c0_12 = arith.constant 0 : index
    %c32_13 = arith.constant 32 : index
    %16 = vector.load %arg5[%c0_12, %c32_13] : memref<8x256xf32, #tpu.memory_space<vmem>>, vector<8x32xf32>
    tpu.vector_store %arg5[%c0_12, %c32_13], %15 {strides = array<i32>} : memref<8x256xf32, #tpu.memory_space<vmem>>, vector<8x32xf32>,
    %17 = vector.extract_strided_slice %0 {offsets = [0, 64], sizes = [8, 32], strides = [1, 1]} : vector<8x256xf32> to vector<8x32xf32>
    %c2 = arith.constant 2 : index
    %c0_14 = arith.constant 0 : index
    %c0_15 = arith.constant 0 : index
    %18 = vector.load %arg3[%c2, %c0_14, %c0_15] : memref<8x32x32xf32, #tpu.memory_space<vmem>>, vector<1x32x32xf32>
    %19 = vector.shape_cast %18 : vector<1x32x32xf32> to vector<32x32xf32>
    %cst_16 = arith.constant dense<0.000000e+00> : vector<8x32xf32>
    %20 = tpu.matmul %17, %19, %cst_16 {dimension_numbers = #tpu.dot_dimension_numbers<[1], [0], [0], [1], [0, 0, 1, 1], [], []>} : vector<8x32xf32>, vector<32x32xf32>, vector<8x32xf32> -> vector<8x32xf32>
    %c0_17 = arith.constant 0 : index
    %c64 = arith.constant 64 : index
    %21 = vector.load %arg4[%c0_17, %c64] : memref<1x256xf32, #tpu.memory_space<vmem>>, vector<1x32xf32>
    %22 = vector.broadcast %21 : vector<1x32xf32> to vector<8x32xf32>
    %23 = arith.addf %20, %22 : vector<8x32xf32>
    %c0_18 = arith.constant 0 : index
    %c64_19 = arith.constant 64 : index
    %24 = vector.load %arg5[%c0_18, %c64_19] : memref<8x256xf32, #tpu.memory_space<vmem>>, vector<8x32xf32>
    tpu.vector_store %arg5[%c0_18, %c64_19], %23 {strides = array<i32>} : memref<8x256xf32, #tpu.memory_space<vmem>>, vector<8x32xf32>,
    %25 = vector.extract_strided_slice %0 {offsets = [0, 96], sizes = [8, 32], strides = [1, 1]} : vector<8x256xf32> to vector<8x32xf32>
    %c3 = arith.constant 3 : index
    %c0_20 = arith.constant 0 : index
    %c0_21 = arith.constant 0 : index
    %26 = vector.load %arg3[%c3, %c0_20, %c0_21] : memref<8x32x32xf32, #tpu.memory_space<vmem>>, vector<1x32x32xf32>
    %27 = vector.shape_cast %26 : vector<1x32x32xf32> to vector<32x32xf32>
    %cst_22 = arith.constant dense<0.000000e+00> : vector<8x32xf32>
    %28 = tpu.matmul %25, %27, %cst_22 {dimension_numbers = #tpu.dot_dimension_numbers<[1], [0], [0], [1], [0, 0, 1, 1], [], []>} : vector<8x32xf32>, vector<32x32xf32>, vector<8x32xf32> -> vector<8x32xf32>
    %c0_23 = arith.constant 0 : index
    %c96 = arith.constant 96 : index
    %29 = vector.load %arg4[%c0_23, %c96] : memref<1x256xf32, #tpu.memory_space<vmem>>, vector<1x32xf32>
    %30 = vector.broadcast %29 : vector<1x32xf32> to vector<8x32xf32>
    %31 = arith.addf %28, %30 : vector<8x32xf32>
    %c0_24 = arith.constant 0 : index
    %c96_25 = arith.constant 96 : index
    %32 = vector.load %arg5[%c0_24, %c96_25] : memref<8x256xf32, #tpu.memory_space<vmem>>, vector<8x32xf32>
    tpu.vector_store %arg5[%c0_24, %c96_25], %31 {strides = array<i32>} : memref<8x256xf32, #tpu.memory_space<vmem>>, vector<8x32xf32>,
    %33 = vector.extract_strided_slice %0 {offsets = [0, 128], sizes = [8, 32], strides = [1, 1]} : vector<8x256xf32> to vector<8x32xf32>
    %c4 = arith.constant 4 : index
    %c0_26 = arith.constant 0 : index
    %c0_27 = arith.constant 0 : index
    %34 = vector.load %arg3[%c4, %c0_26, %c0_27] : memref<8x32x32xf32, #tpu.memory_space<vmem>>, vector<1x32x32xf32>
    %35 = vector.shape_cast %34 : vector<1x32x32xf32> to vector<32x32xf32>
    %cst_28 = arith.constant dense<0.000000e+00> : vector<8x32xf32>
    %36 = tpu.matmul %33, %35, %cst_28 {dimension_numbers = #tpu.dot_dimension_numbers<[1], [0], [0], [1], [0, 0, 1, 1], [], []>} : vector<8x32xf32>, vector<32x32xf32>, vector<8x32xf32> -> vector<8x32xf32>
    %c0_29 = arith.constant 0 : index
    %c128 = arith.constant 128 : index
    %37 = vector.load %arg4[%c0_29, %c128] : memref<1x256xf32, #tpu.memory_space<vmem>>, vector<1x32xf32>
    %38 = vector.broadcast %37 : vector<1x32xf32> to vector<8x32xf32>
    %39 = arith.addf %36, %38 : vector<8x32xf32>
    %c0_30 = arith.constant 0 : index
    %c128_31 = arith.constant 128 : index
    %40 = vector.load %arg5[%c0_30, %c128_31] : memref<8x256xf32, #tpu.memory_space<vmem>>, vector<8x32xf32>
    tpu.vector_store %arg5[%c0_30, %c128_31], %39 {strides = array<i32>} : memref<8x256xf32, #tpu.memory_space<vmem>>, vector<8x32xf32>,
    %41 = vector.extract_strided_slice %0 {offsets = [0, 160], sizes = [8, 32], strides = [1, 1]} : vector<8x256xf32> to vector<8x32xf32>
    %c5 = arith.constant 5 : index
    %c0_32 = arith.constant 0 : index
    %c0_33 = arith.constant 0 : index
    %42 = vector.load %arg3[%c5, %c0_32, %c0_33] : memref<8x32x32xf32, #tpu.memory_space<vmem>>, vector<1x32x32xf32>
    %43 = vector.shape_cast %42 : vector<1x32x32xf32> to vector<32x32xf32>
    %cst_34 = arith.constant dense<0.000000e+00> : vector<8x32xf32>
    %44 = tpu.matmul %41, %43, %cst_34 {dimension_numbers = #tpu.dot_dimension_numbers<[1], [0], [0], [1], [0, 0, 1, 1], [], []>} : vector<8x32xf32>, vector<32x32xf32>, vector<8x32xf32> -> vector<8x32xf32>
    %c0_35 = arith.constant 0 : index
    %c160 = arith.constant 160 : index
    %45 = vector.load %arg4[%c0_35, %c160] : memref<1x256xf32, #tpu.memory_space<vmem>>, vector<1x32xf32>
    %46 = vector.broadcast %45 : vector<1x32xf32> to vector<8x32xf32>
    %47 = arith.addf %44, %46 : vector<8x32xf32>
    %c0_36 = arith.constant 0 : index
    %c160_37 = arith.constant 160 : index
    %48 = vector.load %arg5[%c0_36, %c160_37] : memref<8x256xf32, #tpu.memory_space<vmem>>, vector<8x32xf32>
    tpu.vector_store %arg5[%c0_36, %c160_37], %47 {strides = array<i32>} : memref<8x256xf32, #tpu.memory_space<vmem>>, vector<8x32xf32>,
    %49 = vector.extract_strided_slice %0 {offsets = [0, 192], sizes = [8, 32], strides = [1, 1]} : vector<8x256xf32> to vector<8x32xf32>
    %c6 = arith.constant 6 : index
    %c0_38 = arith.constant 0 : index
    %c0_39 = arith.constant 0 : index
    %50 = vector.load %arg3[%c6, %c0_38, %c0_39] : memref<8x32x32xf32, #tpu.memory_space<vmem>>, vector<1x32x32xf32>
    %51 = vector.shape_cast %50 : vector<1x32x32xf32> to vector<32x32xf32>
    %cst_40 = arith.constant dense<0.000000e+00> : vector<8x32xf32>
    %52 = tpu.matmul %49, %51, %cst_40 {dimension_numbers = #tpu.dot_dimension_numbers<[1], [0], [0], [1], [0, 0, 1, 1], [], []>} : vector<8x32xf32>, vector<32x32xf32>, vector<8x32xf32> -> vector<8x32xf32>
    %c0_41 = arith.constant 0 : index
    %c192 = arith.constant 192 : index
    %53 = vector.load %arg4[%c0_41, %c192] : memref<1x256xf32, #tpu.memory_space<vmem>>, vector<1x32xf32>
    %54 = vector.broadcast %53 : vector<1x32xf32> to vector<8x32xf32>
    %55 = arith.addf %52, %54 : vector<8x32xf32>
    %c0_42 = arith.constant 0 : index
    %c192_43 = arith.constant 192 : index
    %56 = vector.load %arg5[%c0_42, %c192_43] : memref<8x256xf32, #tpu.memory_space<vmem>>, vector<8x32xf32>
    tpu.vector_store %arg5[%c0_42, %c192_43], %55 {strides = array<i32>} : memref<8x256xf32, #tpu.memory_space<vmem>>, vector<8x32xf32>,
    %57 = vector.extract_strided_slice %0 {offsets = [0, 224], sizes = [8, 32], strides = [1, 1]} : vector<8x256xf32> to vector<8x32xf32>
    %c7 = arith.constant 7 : index
    %c0_44 = arith.constant 0 : index
    %c0_45 = arith.constant 0 : index
    %58 = vector.load %arg3[%c7, %c0_44, %c0_45] : memref<8x32x32xf32, #tpu.memory_space<vmem>>, vector<1x32x32xf32>
    %59 = vector.shape_cast %58 : vector<1x32x32xf32> to vector<32x32xf32>
    %cst_46 = arith.constant dense<0.000000e+00> : vector<8x32xf32>
    %60 = tpu.matmul %57, %59, %cst_46 {dimension_numbers = #tpu.dot_dimension_numbers<[1], [0], [0], [1], [0, 0, 1, 1], [], []>} : vector<8x32xf32>, vector<32x32xf32>, vector<8x32xf32> -> vector<8x32xf32>
    %c0_47 = arith.constant 0 : index
    %c224 = arith.constant 224 : index
    %61 = vector.load %arg4[%c0_47, %c224] : memref<1x256xf32, #tpu.memory_space<vmem>>, vector<1x32xf32>
    %62 = vector.broadcast %61 : vector<1x32xf32> to vector<8x32xf32>
    %63 = arith.addf %60, %62 : vector<8x32xf32>
    %c0_48 = arith.constant 0 : index
    %c224_49 = arith.constant 224 : index
    %64 = vector.load %arg5[%c0_48, %c224_49] : memref<8x256xf32, #tpu.memory_space<vmem>>, vector<8x32xf32>
    tpu.vector_store %arg5[%c0_48, %c224_49], %63 {strides = array<i32>} : memref<8x256xf32, #tpu.memory_space<vmem>>, vector<8x32xf32>,
    return
  }
  func.func @transform_0(%arg0: i32, %arg1: i32) -> (i32, i32) {
    %c0_i32 = arith.constant 0 : i32
    return %arg1, %arg0 : i32, i32
  }
  func.func @transform_1(%arg0: i32, %arg1: i32) -> (i32, i32, i32) {
    %c0_i32 = arith.constant 0 : i32
    %c0_i32_0 = arith.constant 0 : i32
    %c0_i32_1 = arith.constant 0 : i32
    return %arg0, %c0_i32, %c0_i32_0 : i32, i32, i32
  }
  func.func @transform_2(%arg0: i32, %arg1: i32) -> (i32, i32) {
    %c0_i32 = arith.constant 0 : i32
    %c0_i32_0 = arith.constant 0 : i32
    return %c0_i32, %arg0 : i32, i32
  }
  func.func @transform_3(%arg0: i32, %arg1: i32) -> (i32, i32) {
    %c0_i32 = arith.constant 0 : i32
    return %arg1, %arg0 : i32, i32
  }
}

</mosaic_0001>

<bundles_post_ra>
// kernel: tpu_custom_call.1
= control target key start
LH: loop header
LB: loop body
LE: loop exit
PB: predicated region body
PF: predicated region fallthrough
CT: control target
= control target key end

     0   :  { %8 = vsyncpa [#allocation3], 0  ;;  %s595_s0 = inlined_call_operand.hbm [shape: f32[8,256], index: 0, kind: input, shape index: {}]   ;;  %s596_s1 = inlined_call_operand.hbm [shape: f32[8,32,32], index: 1, kind: input, shape index: {}]   ;;  %s597_s2 = inlined_call_operand.hbm [shape: f32[1,256], index: 2, kind: input, shape index: {}]   ;;  %s598_s3 = inlined_call_operand.hbm [shape: f32[8,256], index: 3, kind: output, shape index: {}]  }
   0x1   :  { %9 = vsyncpa [#allocation6], 0  ;;  %s26_s14 = sshll.u32 %s596_s1, 4  ;;  %s27_s14 = int_to_ptr.hbm [resolvable:$true] %s26_s14 }
   0x2   :  { %10 = vsyncpa [#allocation4], 0  ;;  %s514_s15 = smov [#allocation5]   ;;  %s16_s19 = sshll.u32 %s595_s0, 4  ;;  %s17_s19 = int_to_ptr.hbm [resolvable:$true] %s16_s19 }
   0x3   :  { %s28_s16 = sshll.u32 %s514_s15, 4  ;;  %s515_s20 = smov 128   ;;  %s29_s16 = int_to_ptr.vmem [resolvable:$true] %s28_s16 }
   0x4   :  { %s516_s21 = smov 8   ;;  %s517_s22 = smov [#allocation2]  }
   0x5   :  { %34 = dma.hbm_to_vmem [thread:$0]  %s27_s14, 4096, %s29_s16, [#allocation6], %s515_s20, %s515_s20, %s516_s21  }
   0x6   :  { %s18_s23 = sshll.u32 %s517_s22, 4  ;;  %s40_s26 = sshll.u32 %s597_s2, 4  ;;  %s19_s23 = int_to_ptr.vmem [resolvable:$true] %s18_s23  ;;  %s41_s26 = int_to_ptr.hbm [resolvable:$true] %s40_s26 }
   0x7   :  { %21 = dma.hbm_to_vmem [thread:$0]  %s17_s19, 256, %s19_s23, [#allocation3]  }
   0x8   :  { %s518_s1 = smov [#allocation7]  }
   0x9   :  { %s42_s27 = sshll.u32 %s518_s1, 4  ;;  %s43_s27 = int_to_ptr.vmem [resolvable:$true] %s42_s27 }
   0xa   :  { %45 = dma.hbm_to_vmem [thread:$0]  %s41_s26, 32, %s43_s27, [#allocation6]  }
   0xb   :  { %508 = dma.done.wait [#allocation3], 256  }
   0xc   :  { %509 = vsyncadd [#allocation3], 4294967040 }
   0xd   :  { %510 = dma.done.wait [#allocation6], 4128  }
   0xe   :  { %511 = vsyncadd [#allocation6], 4294963168  ;;  %v552_v0 = vld [vmem:[#allocation2] sm:$0xff]  ;;  %v97_v1 = vld [vmem:[#allocation5 + $0x38] sm:$0xff]  ;;  %s519_s0 = smov 96   ;;  %s520_s28 = smov 64  }
   0xf   :  { %101 = vrot.lane.b32.xlu1 %v552_v0, %s519_s0  ;;  %142 = vrot.lane.b32.xlu0 %v552_v0, %s520_s28  ;;  %v558_v2 = vld [vmem:[#allocation2 + $0x8] sm:$0xff]  ;;  %v96_v4 = vld [vmem:[#allocation5 + $0x30] sm:$0xff]  ;;  %s521_s2 = smov 32   ;;  %v95_v6 = vld [vmem:[#allocation5 + $0x28] sm:$0xff]  ;;  %vm68_vm0 = vcmask 261120   ;;  %vm132_vm1 = vcmask 523520  }
  0x10   :  { %v138_v3 = vld [vmem:[#allocation5 + $0x58] sm:$0xff]  ;;  %337 = vrot.lane.b32.xlu2 %v558_v2, %s521_s2  ;;  %120 = vmatpush.msra.mxu1 %v97_v1  ;;  %v137_v5 = vld [vmem:[#allocation5 + $0x50] sm:$0xff]  ;;  %v136_v7 = vld [vmem:[#allocation5 + $0x48] sm:$0xff]  ;;  %vm173_vm2 = vcmask 785920   ;;  %s522_s29 = smov [#allocation8]   ;;  %s376_s6 = sshll.u32 %s598_s3, 4  ;;  %s377_s6 = int_to_ptr.hbm [resolvable:$true] %s376_s6 }
  0x11   :  { %161 = vmatpush.msra.mxu2 %v138_v3  ;;  %v94_v8 = vld [vmem:[#allocation5 + $0x20] sm:$0xff]  ;;  %v253_v10 = vld [vmem:[#allocation5 + $0xb8] sm:$0xff]  ;;  %v252_v13 = vld [vmem:[#allocation5 + $0xb0] sm:$0xff]  ;;  %s374_s30 = sshll.u32 %s522_s29, 4  ;;  %vm214_vm3 = vcmask 1048320   ;;  %s375_s30 = int_to_ptr.vmem [resolvable:$true] %s374_s30 }
  0x12   :  { %121 = vmatpush.msra.mxu1 %v96_v4  ;;  %v135_v9 = vld [vmem:[#allocation5 + $0x40] sm:$0xff]  ;;  %v179_v11 = vld [vmem:[#allocation5 + $0x78] sm:$0xff]  ;;  %v178_v14 = vld [vmem:[#allocation5 + $0x70] sm:$0xff] }
  0x13   :  { %162 = vmatpush.msra.mxu2 %v137_v5  ;;  %v293_v12 = vld [vmem:[#allocation5 + $0xd8] sm:$0xff]  ;;  %202 = vmatpush.msra.mxu3 %v179_v11  ;;  %v292_v15 = vld [vmem:[#allocation5 + $0xd0] sm:$0xff]  ;;  %v251_v16 = vld [vmem:[#allocation5 + $0xa8] sm:$0xff] }
  0x14   :  { %122 = vmatpush.msra.mxu1 %v95_v6  ;;  %v177_v17 = vld [vmem:[#allocation5 + $0x68] sm:$0xff]  ;;  %v250_v19 = vld [vmem:[#allocation5 + $0xa0] sm:$0xff]  ;;  %v333_v22 = vld [vmem:[#allocation5 + $0xf8] sm:$0xff] }
  0x15   :  { %163 = vmatpush.msra.mxu2 %v136_v7  ;;  %203 = vmatpush.msra.mxu3 %v178_v14  ;;  %v291_v18 = vld [vmem:[#allocation5 + $0xc8] sm:$0xff]  ;;  %v176_v20 = vld [vmem:[#allocation5 + $0x60] sm:$0xff]  ;;  %v332_v23 = vld [vmem:[#allocation5 + $0xf0] sm:$0xff] }
  0x16   :  { %123 = vmatpush.msra.mxu1 %v94_v8  ;;  %v290_v21 = vld [vmem:[#allocation5 + $0xc0] sm:$0xff]  ;;  %v331_v25 = vld [vmem:[#allocation5 + $0xe8] sm:$0xff]  ;;  %v63_v30 = vld [vmem:[#allocation5 + $0x18] sm:$0xff] }
  0x17   :  { %297 = vrot.lane.b32.xlu1 %v558_v2, %s520_s28  ;;  %183 = vrot.lane.b32.xlu0 %v552_v0, %s521_s2  ;;  %v404_v24 = vld [vmem:[#allocation7] ss:$0 sm:$0xff]  ;;  %v405_v27 = vld [vmem:[#allocation7 + $0x1] ss:$0 sm:$0xff]  ;;  %v62_v31 = vld [vmem:[#allocation5 + $0x10] sm:$0xff] }
  0x18   :  { %257 = vrot.lane.b32.xlu2 %v558_v2, %s519_s0  ;;  %164 = vmatpush.msra.mxu2 %v135_v9  ;;  %v330_v26 = vld [vmem:[#allocation5 + $0xe0] sm:$0xff]  ;;  %v61_v32 = vld [vmem:[#allocation5 + $0x8] sm:$0xff]  ;;  %v220_v36 = vld [vmem:[#allocation5 + $0x98] sm:$0xff] }
  0x19   :  { %276 = vmatpush.msrb.mxu1 %v253_v10  ;;  %204 = vmatpush.msra.mxu3 %v177_v17  ;;  %v406_v28 = vld [vmem:[#allocation7 + $0x1] ss:$0 sm:$0xff]  ;;  %v408_v29 = vld [vmem:[#allocation7] ss:$0 sm:$0xff]  ;;  %v219_v37 = vld [vmem:[#allocation5 + $0x90] sm:$0xff] }
  0x1a   :  { %316 = vmatpush.msrb.mxu2 %v293_v12  ;;  %84 = vmatpush.msra.mxu0 %v63_v30  ;;  %v60_v33 = vld [vmem:[#allocation5] sm:$0xff]  ;;  %v218_v39 = vld [vmem:[#allocation5 + $0x88] sm:$0xff] }
  0x1b   :  { %277 = vmatpush.msrb.mxu1 %v252_v13  ;;  %205 = vmatpush.msra.mxu3 %v176_v20  ;;  %v407_v34 = vld [vmem:[#allocation7] ss:$0 sm:$0xff]  ;;  %v409_v35 = vld [vmem:[#allocation7 + $0x1] ss:$0 sm:$0xff] }
  0x1c   :  { %317 = vmatpush.msrb.mxu2 %v292_v15  ;;  %85 = vmatpush.msra.mxu0 %v62_v31  ;;  %v217_v40 = vld [vmem:[#allocation5 + $0x80] sm:$0xff] }
  0x1d   :  { %278 = vmatpush.msrb.mxu1 %v251_v16  ;;  %356 = vmatpush.msrb.mxu3 %v333_v22  ;;  %v411_v3 = vld [vmem:[#allocation7 + $0x1] ss:$0 sm:$0xff] }
  0x1e   :  { %318 = vmatpush.msrb.mxu2 %v291_v18  ;;  %86 = vmatpush.msra.mxu0 %v61_v32 }
  0x1f   :  { %279 = vmatpush.msrb.mxu1 %v250_v19  ;;  %103 = vrot.lane.b32.xlu0 %v404_v24, %s519_s0 }
  0x20   :  { %319 = vmatpush.msrb.mxu2 %v290_v21  ;;  %357 = vmatpush.msrb.mxu3 %v332_v23 }
  0x21   :  { %259 = vrot.lane.b32.xlu1 %v405_v27, %s519_s0  ;;  %144 = vrot.lane.b32.xlu2 %v408_v29, %s520_s28 }
  0x22   :  { %358 = vmatpush.msrb.mxu3 %v331_v25  ;;  %87 = vmatpush.msra.mxu0 %v60_v33 }
  0x23   :  { %387 = vmatmul.msk.f32.vlgmr.msra.gmra.mxu0 %vm68_vm0, %v552_v0  ;;  %v410_v0 = vld [vmem:[#allocation7] ss:$0 sm:$0xff] }
  0x24   :  { %359 = vmatpush.msrb.mxu3 %v330_v26  ;;  %240 = vmatpush.msrb.mxu0 %v220_v36 }
  0x26   :  { %241 = vmatpush.msrb.mxu0 %v219_v37 }
  0x27   :  { %299 = vrot.lane.b32.xlu0 %v406_v28, %s520_s28 }
  0x28   :  { %242 = vmatpush.msrb.mxu0 %v218_v39 }
  0x29   :  { %185 = vrot.lane.b32.xlu1 %v407_v34, %s521_s2  ;;  %339 = vrot.lane.b32.xlu2 %v409_v35, %s521_s2 }
  0x2a   :  { %243 = vmatpush.msrb.mxu0 %v217_v40 }
  0x2b   :  { %391 = vmatmul.msk.f32.vlgmr.msrb.gmra.mxu0 %vm68_vm0, %v558_v2 }
  0x6a   :  { %v338_v38 = vpop.permute.xlu2 %337 }
  0x72   :  { %v258_v43 = vpop.permute.xlu2 %257 }
  0x7b   :  { %v145_v50 = vpop.permute.xlu2 %144 }
  0x81   :  { %v102_v41 = vpop.permute.xlu1 %101  ;;  %v143_v42 = vpop.permute.xlu0 %142 }
  0x82   :  { %388 = vmatmul.msk.f32.vlgmr.msra.gmra.mxu1 %vm68_vm0, %v102_v41  ;;  %389 = vmatmul.msk.f32.vlgmr.msra.gmra.mxu2 %vm68_vm0, %v143_v42 }
  0x83   :  { %v340_v61 = vpop.permute.xlu2 %339 }
  0x89   :  { %v298_v44 = vpop.permute.xlu1 %297  ;;  %v184_v45 = vpop.permute.xlu0 %183 }
  0x8a   :  { %390 = vmatmul.msk.f32.vlgmr.msra.gmra.mxu3 %vm68_vm0, %v184_v45  ;;  %392 = vmatmul.msk.f32.vlgmr.msrb.gmra.mxu1 %vm68_vm0, %v258_v43 }
  0x8b   :  { %393 = vmatmul.msk.f32.vlgmr.msrb.gmra.mxu2 %vm68_vm0, %v298_v44 }
  0x91   :  { %v104_v46 = vpop.permute.xlu0 %103 }
  0x92   :  { %394 = vmatmul.msk.f32.vlgmr.msrb.gmra.mxu3 %vm68_vm0, %v338_v38 }
  0x93   :  { %v260_v49 = vpop.permute.xlu1 %259 }
  0x99   :  { %v300_v56 = vpop.permute.xlu0 %299 }
  0x9b   :  { %v186_v55 = vpop.permute.xlu1 %185 }
  0xa0   :  { %v89_v1 = vpop.f32.mrf.mxu0 }
  0xa1   :  { %v90_v2 = vadd.f32 %v410_v0, %v89_v1 }
  0xa3   :  { %92 = vst.msk [vmem:[#allocation8] sm:$0xff] %vm68_vm0, %v90_v2 }
  0xa8   :  { %v245_v4 = vpop.f32.mrf.mxu0 }
  0xa9   :  { %v246_v5 = vadd.f32 %v411_v3, %v245_v4 }
  0xab   :  { %248 = vst.msk [vmem:[#allocation8 + $0x8] sm:$0xff] %vm68_vm0, %v246_v5 }
  0xff   :  { %v125_v47 = vpop.f32.mrf.mxu1 }
 0x100   :  { %v126_v48 = vadd.f32 %v125_v47, %v104_v46 }
 0x102   :  { %129 = vrot.lane.b32.xlu0 %v126_v48, %s521_s2 }
 0x105   :  { %v166_v51 = vpop.f32.mrf.mxu2 }
 0x106   :  { %v167_v52 = vadd.f32 %v166_v51, %v145_v50 }
 0x107   :  { %v281_v53 = vpop.f32.mrf.mxu1 }
 0x108   :  { %v282_v54 = vadd.f32 %v281_v53, %v260_v49  ;;  %170 = vrot.lane.b32.xlu2 %v167_v52, %s520_s28 }
 0x10a   :  { %285 = vrot.lane.b32.xlu1 %v282_v54, %s521_s2 }
 0x10d   :  { %v207_v57 = vpop.f32.mrf.mxu3 }
 0x10e   :  { %v321_v58 = vpop.f32.mrf.mxu2  ;;  %v208_v59 = vadd.f32 %v207_v57, %v186_v55 }
 0x10f   :  { %v322_v60 = vadd.f32 %v321_v58, %v300_v56 }
 0x111   :  { %325 = vrot.lane.b32.xlu0 %v322_v60, %s520_s28 }
 0x112   :  { %211 = vrot.lane.b32.xlu1 %v208_v59, %s519_s0 }
 0x115   :  { %v361_v62 = vpop.f32.mrf.mxu3 }
 0x116   :  { %v362_v63 = vadd.f32 %v361_v62, %v340_v61 }
 0x118   :  { %365 = vrot.lane.b32.xlu2 %v362_v63, %s519_s0 }
 0x162   :  { %v171_v7 = vpop.permute.xlu2 %170 }
 0x172   :  { %v366_v11 = vpop.permute.xlu2 %365 }
 0x174   :  { %v130_v6 = vpop.permute.xlu0 %129 }
 0x175   :  { %133 = vst.msk [vmem:[#allocation8] sm:$0xff] %vm132_vm1, %v130_v6 }
 0x176   :  { %174 = vst.msk [vmem:[#allocation8] sm:$0xff] %vm173_vm2, %v171_v7 }
 0x17c   :  { %v286_v8 = vpop.permute.xlu1 %285 }
 0x17d   :  { %288 = vst.msk [vmem:[#allocation8 + $0x8] sm:$0xff] %vm132_vm1, %v286_v8 }
 0x183   :  { %v326_v9 = vpop.permute.xlu0 %325 }
 0x184   :  { %328 = vst.msk [vmem:[#allocation8 + $0x8] sm:$0xff] %vm173_vm2, %v326_v9  ;;  %v212_v10 = vpop.permute.xlu1 %211 }
 0x185   :  { %215 = vst.msk [vmem:[#allocation8] sm:$0xff] %vm214_vm3, %v212_v10 }
 0x186   :  { %368 = vst.msk [vmem:[#allocation8 + $0x8] sm:$0xff] %vm214_vm3, %v366_v11 }
 0x187   :  { %379 = dma.vmem_to_hbm [thread:$0]  %s375_s30, 256, %s377_s6, [#allocation4]  }
 0x188   :  { %512 = dma.done.wait [#allocation4], 256  }
 0x189   :  { %513 = vsyncadd [#allocation4], 4294967040 }
 0x18a   :  { %384 = vsyncpa [#allocation3], 1 }
 0x18b   :  { %385 = vsyncpa [#allocation6], 1 }
 0x18c   :  { %386 = vsyncpa [#allocation4], 1 }

</bundles_post_ra>
